<compile_context>
chip_gen: v7x
topology: tpu7x:2x2x1
jax: 0.10.0
libtpu: 0.0.40
codegen_flags: <defaults>
</compile_context>

<pallas_src>
import functools

import jax
import jax.numpy as jnp
from jax.experimental import pallas as pl
from jax.experimental.pallas import tpu as pltpu


def _round_up(x, m):
    return (x + m - 1) // m * m


def _cdiv(a, b):
    return (a + b - 1) // b


def attention_kernel(h_ref, w1_ref, b1_ref, w2_ref, b2_ref, a_ref):
    # h_ref : (TM, L)   x.dtype (f32 straight from HBM; cast in-kernel)
    # w1_ref: (L, D)    compute dtype (bf16 fast path / f32 exact path)
    # b1_ref: (1, D)    f32
    # w2_ref: (D, Kp)   compute dtype
    # b2_ref: (1, Kp)   f32
    # a_ref : (TM, Kp)  compute dtype (Kp multiple of 128 -> unmasked stores)
    h = h_ref[...].astype(w1_ref.dtype)            # free VPU cast under the DMA
    z = jnp.dot(h, w1_ref[...], preferred_element_type=jnp.float32)
    z = jnp.tanh(z + b1_ref[...])                  # f32 epilogue (VPU + EUP)
    a = jnp.dot(z.astype(w2_ref.dtype), w2_ref[...],
                preferred_element_type=jnp.float32) + b2_ref[...]
    a_ref[...] = a.astype(a_ref.dtype)


@functools.partial(jax.jit, static_argnames=("tm", "compute_dtype"))
def attention_forward(x, w1, b1, w2, b2, *, tm=1024, compute_dtype=jnp.bfloat16):
    """x: (B, N, *spatial); w1: (L, D); b1: (1, D) or (D,); w2: (D, K); b2: (1, K) or (K,).

    Returns (A, H) with A: (B, N, K), H: (B, N, L) — same as the PyTorch module.
    Default compute_dtype=bf16 uses bf16 MXU operands / f32 accumulation (fast
    path); pass compute_dtype=jnp.float32 for exact module numerics.
    """
    B, N = x.shape[0], x.shape[1]
    H = x.reshape(B, N, -1)                 # same semantics as torch .view (3/4/5-D x)
    L = H.shape[-1]
    D = w1.shape[1]
    K = w2.shape[1]

    R = B * N
    # Row tile: tiny problems collapse to one exact full-array block; large ones
    # use `tm`-row tiles (tm default 1024: multiple of 256 for v6e/v7x MXU).
    if R <= 128:
        TM = R
    else:
        TM = min(tm, _round_up(R, 128))
        # v7x megacore: guarantee >=2 row-tile grid steps once the problem is
        # big enough to split, so both TensorCores get work on the "parallel" axis.
        if R >= 512 and _cdiv(R, TM) < 2:
            TM = _round_up(_cdiv(R, 2), 128)
    grid_r = _cdiv(R, TM)

    K_pad = _round_up(max(K, 128), 128)     # lane-dense output (unmasked vst)
    out_dtype = compute_dtype               # bf16 halves writeback; f32 = exact path

    h_rows = H.reshape(R, L)                # no copy, no cast: kernel reads f32 once
    w1c = w1.astype(compute_dtype)
    b1f = b1.reshape(1, D).astype(jnp.float32)
    w2p = jnp.pad(w2, ((0, 0), (0, K_pad - K))).astype(compute_dtype)
    b2p = jnp.pad(b2.reshape(1, K), ((0, 0), (0, K_pad - K))).astype(jnp.float32)

    in_bytes = jnp.dtype(x.dtype).itemsize
    out_bytes = jnp.dtype(out_dtype).itemsize
    w_bytes = jnp.dtype(compute_dtype).itemsize
    cost = pl.CostEstimate(
        flops=2 * R * (L * D + D * K_pad),
        transcendentals=R * D,
        bytes_accessed=R * (L * in_bytes + K_pad * out_bytes)
        + (L * D + D * K_pad) * w_bytes + (D + K_pad) * 4,
    )

    a_pad = pl.pallas_call(
        attention_kernel,
        out_shape=jax.ShapeDtypeStruct((R, K_pad), out_dtype),
        grid_spec=pltpu.PrefetchScalarGridSpec(
            num_scalar_prefetch=0,
            grid=(grid_r,),
            in_specs=[
                pl.BlockSpec((TM, L), lambda i: (i, 0)),      # H row tile (f32)
                pl.BlockSpec((L, D), lambda i: (0, 0)),       # W1 (grid-invariant)
                pl.BlockSpec((1, D), lambda i: (0, 0)),       # b1
                pl.BlockSpec((D, K_pad), lambda i: (0, 0)),   # W2 (K padded to 128)
                pl.BlockSpec((1, K_pad), lambda i: (0, 0)),   # b2
            ],
            out_specs=pl.BlockSpec((TM, K_pad), lambda i: (i, 0)),
        ),
        compiler_params=pltpu.CompilerParams(
            dimension_semantics=("parallel",)),
        cost_estimate=cost,
    )(h_rows, w1c, b1f, w2p, b2p)

    A = a_pad[:, :K].astype(x.dtype).reshape(B, N, K)
    return A, H


if __name__ == "__main__":
    # Small shapes consistent with the module: x (B=2, N=4 instances, 16x16
    # spatial) => L = 256, hidden D = 128, K = 4 attention heads.
    B, N, Hs, Ws = 2, 4, 16, 16
    L, D, K = Hs * Ws, 128, 4

    key = jax.random.PRNGKey(0)
    kx, k1, k2, k3, k4 = jax.random.split(key, 5)

    x = jax.random.normal(kx, (B, N, Hs, Ws), dtype=jnp.float32)

    # Deterministic PyTorch-like uniform(-1/sqrt(fan_in), 1/sqrt(fan_in)) init.
    s1 = 1.0 / (L ** 0.5)
    s2 = 1.0 / (D ** 0.5)
    w1 = jax.random.uniform(k1, (L, D), jnp.float32, -s1, s1)
    b1 = jax.random.uniform(k2, (1, D), jnp.float32, -s1, s1)
    w2 = jax.random.uniform(k3, (D, K), jnp.float32, -s2, s2)
    b2 = jax.random.uniform(k4, (1, K), jnp.float32, -s2, s2)

    # Pure-JAX high-precision reference (PyTorch f32 semantics).
    hi = jax.lax.Precision.HIGHEST
    H_ref = x.reshape(B, N, L)
    A_ref = jnp.dot(jnp.tanh(jnp.dot(H_ref, w1, precision=hi) + b1), w2,
                    precision=hi) + b2

    # Fast path: bf16 MXU operands, f32 accumulation, bf16 writeback.
    A_bf, Hmat = jax.block_until_ready(attention_forward(x, w1, b1, w2, b2))
    assert A_bf.shape == (B, N, K) and Hmat.shape == (B, N, L)
    assert bool(jnp.array_equal(Hmat, H_ref))
    assert bool(jnp.allclose(A_bf, A_ref, atol=5e-2, rtol=5e-2)), \
        float(jnp.max(jnp.abs(A_bf - A_ref)))

    # Exact path: full f32 matches the PyTorch module at tight tolerance.
    A_f32, _ = jax.block_until_ready(
        attention_forward(x, w1, b1, w2, b2, compute_dtype=jnp.float32))
    assert bool(jnp.allclose(A_f32, A_ref, atol=2e-4, rtol=2e-4)), \
        float(jnp.max(jnp.abs(A_f32 - A_ref)))

    print("KERNEL_OK")
</pallas_src>

<mosaic_0001>
module attributes {stable_mosaic.version = 11 : i64} {
  func.func @attention_kernel(%arg0: i32, %arg1: memref<8x256xf32, #tpu.memory_space<vmem>>, %arg2: memref<256x128xbf16, #tpu.memory_space<vmem>>, %arg3: memref<1x128xf32, #tpu.memory_space<vmem>>, %arg4: memref<128x128xbf16, #tpu.memory_space<vmem>>, %arg5: memref<1x128xf32, #tpu.memory_space<vmem>>, %arg6: memref<8x128xbf16, #tpu.memory_space<vmem>>) attributes {dimension_semantics = [#tpu.dimension_semantics<parallel>], iteration_bounds = array<i64: 1>, scalar_prefetch = 0 : i64, scratch_operands = 0 : i64, tpu.core_type = #tpu.core_type<tc>, window_params = [{transform_indices = @transform_0, window_bounds = array<i64: 8, 256>}, {pipeline_mode = #tpu.pipeline_mode<synchronous>, transform_indices = @transform_1, window_bounds = array<i64: 256, 128>}, {pipeline_mode = #tpu.pipeline_mode<synchronous>, transform_indices = @transform_2, window_bounds = array<i64: 1, 128>}, {pipeline_mode = #tpu.pipeline_mode<synchronous>, transform_indices = @transform_3, window_bounds = array<i64: 128, 128>}, {pipeline_mode = #tpu.pipeline_mode<synchronous>, transform_indices = @transform_4, window_bounds = array<i64: 1, 128>}, {transform_indices = @transform_5, window_bounds = array<i64: 8, 128>}]} {
    %c0 = arith.constant 0 : index
    %c0_0 = arith.constant 0 : index
    %0 = vector.load %arg1[%c0, %c0_0] : memref<8x256xf32, #tpu.memory_space<vmem>>, vector<8x256xf32>
    %1 = arith.truncf %0 : vector<8x256xf32> to vector<8x256xbf16>
    %c0_1 = arith.constant 0 : index
    %c0_2 = arith.constant 0 : index
    %2 = vector.load %arg2[%c0_1, %c0_2] : memref<256x128xbf16, #tpu.memory_space<vmem>>, vector<256x128xbf16>
    %cst = arith.constant dense<0.000000e+00> : vector<8x128xf32>
    %3 = tpu.matmul %1, %2, %cst {dimension_numbers = #tpu.dot_dimension_numbers<[1], [0], [0], [1], [0, 0, 1, 1], [], []>} : vector<8x256xbf16>, vector<256x128xbf16>, vector<8x128xf32> -> vector<8x128xf32>
    %c0_3 = arith.constant 0 : index
    %c0_4 = arith.constant 0 : index
    %4 = vector.load %arg3[%c0_3, %c0_4] : memref<1x128xf32, #tpu.memory_space<vmem>>, vector<1x128xf32>
    %5 = vector.broadcast %4 : vector<1x128xf32> to vector<8x128xf32>
    %6 = arith.addf %3, %5 : vector<8x128xf32>
    %7 = math.tanh %6 : vector<8x128xf32>
    %8 = arith.truncf %7 : vector<8x128xf32> to vector<8x128xbf16>
    %c0_5 = arith.constant 0 : index
    %c0_6 = arith.constant 0 : index
    %9 = vector.load %arg4[%c0_5, %c0_6] : memref<128x128xbf16, #tpu.memory_space<vmem>>, vector<128x128xbf16>
    %cst_7 = arith.constant dense<0.000000e+00> : vector<8x128xf32>
    %10 = tpu.matmul %8, %9, %cst_7 {dimension_numbers = #tpu.dot_dimension_numbers<[1], [0], [0], [1], [0, 0, 1, 1], [], []>} : vector<8x128xbf16>, vector<128x128xbf16>, vector<8x128xf32> -> vector<8x128xf32>
    %c0_8 = arith.constant 0 : index
    %c0_9 = arith.constant 0 : index
    %11 = vector.load %arg5[%c0_8, %c0_9] : memref<1x128xf32, #tpu.memory_space<vmem>>, vector<1x128xf32>
    %12 = vector.broadcast %11 : vector<1x128xf32> to vector<8x128xf32>
    %13 = arith.addf %10, %12 : vector<8x128xf32>
    %14 = arith.truncf %13 : vector<8x128xf32> to vector<8x128xbf16>
    %c0_10 = arith.constant 0 : index
    %c0_11 = arith.constant 0 : index
    %15 = vector.load %arg6[%c0_10, %c0_11] : memref<8x128xbf16, #tpu.memory_space<vmem>>, vector<8x128xbf16>
    tpu.vector_store %arg6[%c0_10, %c0_11], %14 {strides = array<i32>} : memref<8x128xbf16, #tpu.memory_space<vmem>>, vector<8x128xbf16>,
    return
  }
  func.func @transform_0(%arg0: i32) -> (i32, i32) {
    %c0_i32 = arith.constant 0 : i32
    %c0_i32_0 = arith.constant 0 : i32
    return %arg0, %c0_i32 : i32, i32
  }
  func.func @transform_1(%arg0: i32) -> (i32, i32) {
    %c0_i32 = arith.constant 0 : i32
    %c0_i32_0 = arith.constant 0 : i32
    %c0_i32_1 = arith.constant 0 : i32
    return %c0_i32, %c0_i32_0 : i32, i32
  }
  func.func @transform_2(%arg0: i32) -> (i32, i32) {
    %c0_i32 = arith.constant 0 : i32
    %c0_i32_0 = arith.constant 0 : i32
    %c0_i32_1 = arith.constant 0 : i32
    return %c0_i32, %c0_i32_0 : i32, i32
  }
  func.func @transform_3(%arg0: i32) -> (i32, i32) {
    %c0_i32 = arith.constant 0 : i32
    %c0_i32_0 = arith.constant 0 : i32
    %c0_i32_1 = arith.constant 0 : i32
    return %c0_i32, %c0_i32_0 : i32, i32
  }
  func.func @transform_4(%arg0: i32) -> (i32, i32) {
    %c0_i32 = arith.constant 0 : i32
    %c0_i32_0 = arith.constant 0 : i32
    %c0_i32_1 = arith.constant 0 : i32
    return %c0_i32, %c0_i32_0 : i32, i32
  }
  func.func @transform_5(%arg0: i32) -> (i32, i32) {
    %c0_i32 = arith.constant 0 : i32
    %c0_i32_0 = arith.constant 0 : i32
    return %arg0, %c0_i32 : i32, i32
  }
}

</mosaic_0001>

<bundles_post_ra>
// kernel: attention_forward.1
= control target key start
LH: loop header
LB: loop body
LE: loop exit
PB: predicated region body
PF: predicated region fallthrough
CT: control target
= control target key end

     0   :  { %v424_v1 = vmov 0.0   ;;  %vm425_vm0 = vmmov 0   ;;  %s552_s1 = inlined_call_operand.vmem [shape: bf16[256,128], index: 1, kind: input, shape index: {}]   ;;  %s553_s0 = inlined_call_operand.vmem [shape: f32[8,256], index: 0, kind: input, shape index: {}]   ;;  %s554_s3 = inlined_call_operand.vmem [shape: bf16[128,128], index: 3, kind: input, shape index: {}]   ;;  %s555_s2 = inlined_call_operand.vmem [shape: f32[1,128], index: 2, kind: input, shape index: {}]   ;;  %s556_s4 = inlined_call_operand.vmem [shape: f32[1,128], index: 4, kind: input, shape index: {}]   ;;  %s557_s5 = inlined_call_operand.vmem [shape: bf16[8,128], index: 5, kind: output, shape index: {}]  }
   0x1   :  { %v398_v0 = vld [vmem:[%s552_s1 + $0x40] sm:$0xff]   ;;  %376 = vmatprep.subr.bf16.mxu1 %v424_v1  ;;  %v400_v3 = vld [vmem:[%s552_s1 + $0x48] sm:$0xff]   ;;  %v402_v5 = vld [vmem:[%s552_s1 + $0x50] sm:$0xff]   ;;  %392 = vmatprep.mubr.msk.bf16.mxu1 %vm425_vm0, %v424_v1 }
   0x2   :  { %v399_v2 = vld [vmem:[%s552_s1] sm:$0xff]   ;;  %345 = vmatprep.subr.bf16.mxu0 %v398_v0  ;;  %v401_v4 = vld [vmem:[%s552_s1 + $0x8] sm:$0xff]   ;;  %v403_v6 = vld [vmem:[%s552_s1 + $0x10] sm:$0xff]  }
   0x3   :  { %346 = vmatpush3.bf16.msra.mxu0 %v399_v2  ;;  %v404_v7 = vld [vmem:[%s552_s1 + $0x58] sm:$0xff]   ;;  %v406_v9 = vld [vmem:[%s552_s1 + $0x60] sm:$0xff]   ;;  %v408_v11 = vld [vmem:[%s552_s1 + $0x68] sm:$0xff]  }
   0x4   :  { %347 = vmatprep.subr.bf16.mxu0 %v400_v3  ;;  %v405_v8 = vld [vmem:[%s552_s1 + $0x18] sm:$0xff]   ;;  %v407_v10 = vld [vmem:[%s552_s1 + $0x20] sm:$0xff]   ;;  %v22_v12 = vld [vmem:[%s553_s0 + $0x8] sm:$0xff] }
   0x5   :  { %v409_v13 = vld [vmem:[%s552_s1 + $0x28] sm:$0xff]   ;;  %v24_v14 = vpack.c.bf16 %v22_v12, %v22_v12  ;;  %v414_v15 = vld [vmem:[%s554_s3] sm:$0xff]   ;;  %v410_v16 = vld [vmem:[%s552_s1 + $0x70] sm:$0xff]  }
   0x6   :  { %v415_v17 = vld [vmem:[%s554_s3 + $0x8] sm:$0xff]   ;;  %377 = vmatpush3.bf16.msra.mxu1 %v414_v15  ;;  %v411_v18 = vld [vmem:[%s552_s1 + $0x30] sm:$0xff]   ;;  %v412_v19 = vld [vmem:[%s552_s1 + $0x78] sm:$0xff]  }
   0x7   :  { %348 = vmatpush3.bf16.msra.mxu0 %v401_v4  ;;  %192 = vmatprep.mubr.bf16.mxu0 %v24_v14  ;;  %v416_v20 = vld [vmem:[%s554_s3 + $0x10] sm:$0xff]   ;;  %v413_v21 = vld [vmem:[%s552_s1 + $0x38] sm:$0xff]   ;;  %v21_v22 = vld [vmem:[%s553_s0] sm:$0xff] }
   0x8   :  { %349 = vmatprep.subr.bf16.mxu0 %v402_v5  ;;  %378 = vmatprep.subr.bf16.mxu1 %v424_v1  ;;  %v23_v23 = vpack.c.bf16 %v21_v22, %v21_v22  ;;  %v417_v24 = vld [vmem:[%s554_s3 + $0x18] sm:$0xff]   ;;  %v418_v25 = vld [vmem:[%s554_s3 + $0x20] sm:$0xff]   ;;  %v419_v26 = vld [vmem:[%s554_s3 + $0x28] sm:$0xff]  }
   0x9   :  { %v420_v27 = vld [vmem:[%s554_s3 + $0x30] sm:$0xff]   ;;  %v421_v28 = vld [vmem:[%s554_s3 + $0x38] sm:$0xff]   ;;  %v319_v30 = vld [vmem:[%s555_s2] ss:$0 sm:$0xff] }
   0xa   :  { %379 = vmatpush3.bf16.msra.mxu1 %v415_v17  ;;  %v336_v38 = vld [vmem:[%s556_s4] ss:$0 sm:$0xff] }
   0xb   :  { %350 = vmatpush3.bf16.msra.mxu0 %v403_v6  ;;  %380 = vmatprep.subr.bf16.mxu1 %v424_v1 }
   0xc   :  { %351 = vmatprep.subr.bf16.mxu0 %v404_v7 }
   0xe   :  { %381 = vmatpush3.bf16.msra.mxu1 %v416_v20 }
   0xf   :  { %352 = vmatpush3.bf16.msra.mxu0 %v405_v8  ;;  %382 = vmatprep.subr.bf16.mxu1 %v424_v1 }
  0x10   :  { %353 = vmatprep.subr.bf16.mxu0 %v406_v9 }
  0x12   :  { %383 = vmatpush3.bf16.msra.mxu1 %v417_v24 }
  0x13   :  { %354 = vmatpush3.bf16.msra.mxu0 %v407_v10  ;;  %384 = vmatprep.subr.bf16.mxu1 %v424_v1 }
  0x14   :  { %355 = vmatprep.subr.bf16.mxu0 %v408_v11 }
  0x16   :  { %385 = vmatpush3.bf16.msra.mxu1 %v418_v25 }
  0x17   :  { %356 = vmatpush3.bf16.msra.mxu0 %v409_v13  ;;  %386 = vmatprep.subr.bf16.mxu1 %v424_v1 }
  0x18   :  { %357 = vmatprep.subr.bf16.mxu0 %v410_v16 }
  0x1a   :  { %387 = vmatpush3.bf16.msra.mxu1 %v419_v26 }
  0x1b   :  { %358 = vmatpush3.bf16.msra.mxu0 %v411_v18  ;;  %388 = vmatprep.subr.bf16.mxu1 %v424_v1 }
  0x1c   :  { %359 = vmatprep.subr.bf16.mxu0 %v412_v19 }
  0x1e   :  { %389 = vmatpush3.bf16.msra.mxu1 %v420_v27 }
  0x1f   :  { %360 = vmatpush3.bf16.msra.mxu0 %v413_v21  ;;  %390 = vmatprep.subr.bf16.mxu1 %v424_v1 }
  0x22   :  { %193 = vmatmul.mubr.bf16.vlgmr.msra.gmra.mrb[0].mxu0 %v23_v23  ;;  %391 = vmatpush3.bf16.msra.mxu1 %v421_v28 }
  0xf5   :  { %v361_v29 = vpop.f32.mrb[0].mxu0 }
  0xf6   :  { %v362_v31 = vpop.f32.mrb[1].mxu0 }
  0xf7   :  { %v363_v32 = vadd.f32 %v362_v31, %v361_v29  ;;  %v364_v33 = vpop.f32.mrb[2].mxu0 }
  0xf8   :  { %v365_v34 = vpop.f32.mrb[3].mxu0 }
  0xf9   :  { %v195_v35 = vadd.f32 %v363_v32, %v319_v30 }
  0xfb   :  { %422 = vtanh.f32 %v195_v35 }
 0x105   :  { %v423_v36 = vpop.eup %422 }
 0x106   :  { %v201_v37 = vpack.c.bf16 %v423_v36, %v423_v36 }
 0x108   :  { %393 = vmatmul.mubr.bf16.vlgmr.msra.gmra.mrb[0].mxu1 %v201_v37 }
 0x1db   :  { %v307_v39 = vpop.f32.mrb[0].mxu1 }
 0x1dc   :  { %v308_v40 = vadd.f32 %v336_v38, %v307_v39  ;;  %v394_v41 = vpop.f32.mrb[1].mxu1 }
 0x1dd   :  { %v310_v42 = vpop.f32.mrb[2].mxu1 }
 0x1de   :  { %v313_v43 = vpack.c.bf16 %v308_v40, %v308_v40  ;;  %v395_v44 = vpop.f32.mrb[3].mxu1 }
 0x1e0   :  { %314 = vst [vmem:[%s557_s5] sm:$0xf] %v313_v43 }

</bundles_post_ra>
